<compile_context>
chip_gen: v5e
topology: v5e:2x2
jax: 0.10.0
libtpu: 0.0.40
codegen_flags: <defaults>
</compile_context>

<pallas_src>
import jax
import jax.numpy as jnp
from jax.experimental import pallas as pl
from jax.experimental.pallas import tpu as pltpu

_LANES = 1024          # lane-dense last dim (multiple of 128)
_MAX_TILE_ROWS = 256   # (256, 1024) f32 tile = 1 MiB per array


def _round_up(a: int, b: int) -> int:
    return -(-a // b) * b


def _gaussian_dropout_kernel(alpha: float):
    """Kernel body with alpha baked in as a compile-time constant."""

    def kernel(x_ref, n_ref, o_ref):
        # eps ~ N(1, alpha^2): affine-transform the standard-normal noise tile,
        # then multiply elementwise.  Python scalars keep the compute dtype
        # (f32 for f32 inputs, bf16 for bf16 inputs) — no f32 round-trip.
        eps = n_ref[...] * alpha + 1.0
        o_ref[...] = (x_ref[...] * eps).astype(o_ref.dtype)

    return kernel


def _apply_dropout_2d(x2d, noise2d, alpha: float, tile_rows: int):
    """Run the tiled elementwise kernel on a padded (rows, _LANES) slab."""
    rows, lanes = x2d.shape
    assert rows % tile_rows == 0 and lanes % 128 == 0
    elems = rows * lanes
    bytes_accessed = elems * (2 * x2d.dtype.itemsize + noise2d.dtype.itemsize)

    return pl.pallas_call(
        _gaussian_dropout_kernel(alpha),
        out_shape=jax.ShapeDtypeStruct((rows, lanes), x2d.dtype),
        grid=(rows // tile_rows,),
        in_specs=[
            pl.BlockSpec((tile_rows, lanes), lambda i: (i, 0)),   # x tile
            pl.BlockSpec((tile_rows, lanes), lambda i: (i, 0)),   # noise tile
        ],
        out_specs=pl.BlockSpec((tile_rows, lanes), lambda i: (i, 0)),
        compiler_params=pltpu.CompilerParams(
            dimension_semantics=("parallel",)),
        cost_estimate=pl.CostEstimate(
            flops=3 * elems, transcendentals=0, bytes_accessed=bytes_accessed),
    )(x2d, noise2d)


def gaussian_dropout(x, p: float = 0.5, key=None):
    """Pallas implementation of GaussianDropout.forward (any input shape)."""
    if not 0.0 <= p < 1.0:
        raise ValueError(f"GaussianDropout requires 0 <= p < 1, got {p}")
    if key is None:
        key = jax.random.PRNGKey(0)
    alpha = p / (1.0 - p)

    total = x.size
    # Noise / compute dtype: keep bf16/f16 inputs in their native dtype
    # (v6e/v7x VALU handles bf16); everything else computes in f32.
    noise_dtype = x.dtype if jnp.issubdtype(x.dtype, jnp.floating) else jnp.float32

    # Lane-dense re-layout: flatten and pad to a (rows, _LANES) slab whose row
    # count divides evenly into (8,128)-aligned tiles.
    rows = -(-total // _LANES)
    tile_rows = _MAX_TILE_ROWS if rows >= _MAX_TILE_ROWS else _round_up(rows, 8)
    rows_padded = _round_up(rows, tile_rows)
    padded_total = rows_padded * _LANES

    flat = x.reshape(-1)
    if padded_total != total:
        flat = jnp.pad(flat, (0, padded_total - total))
    x2d = flat.reshape(rows_padded, _LANES)
    noise2d = jax.random.normal(key, (rows_padded, _LANES), dtype=noise_dtype)

    out2d = _apply_dropout_2d(x2d, noise2d, alpha, tile_rows)
    return out2d.reshape(-1)[:total].reshape(x.shape)


if __name__ == "__main__":
    key = jax.random.PRNGKey(0)
    k_x, k_noise, k_chk_x, k_chk_n = jax.random.split(key, 4)

    # Exact check of the kernel against a pure-JAX reference (same noise slab).
    p = 0.5
    alpha = p / (1.0 - p)
    x_chk = jax.random.normal(k_chk_x, (8, _LANES), dtype=jnp.float32)
    n_chk = jax.random.normal(k_chk_n, (8, _LANES), dtype=jnp.float32)
    got = _apply_dropout_2d(x_chk, n_chk, alpha, tile_rows=8)
    ref = x_chk * (n_chk * alpha + 1.0)
    assert jnp.allclose(got, ref, rtol=1e-6, atol=1e-6)

    # End-to-end NCHW forward, consistent with the module's elementwise use.
    x = jax.random.normal(k_x, (2, 4, 16, 16), dtype=jnp.float32)
    y = gaussian_dropout(x, p=p, key=k_noise)
    jax.block_until_ready(y)

    assert y.shape == x.shape
    assert y.dtype == x.dtype
    assert bool(jnp.isfinite(y).all())
    print("KERNEL_OK")
</pallas_src>

<mosaic_0001>
module attributes {stable_mosaic.version = 11 : i64} {
  func.func @kernel(%arg0: i32, %arg1: memref<8x1024xf32, #tpu.memory_space<vmem>>, %arg2: memref<8x1024xf32, #tpu.memory_space<vmem>>, %arg3: memref<8x1024xf32, #tpu.memory_space<vmem>>) attributes {dimension_semantics = [#tpu.dimension_semantics<parallel>], iteration_bounds = array<i64: 1>, scalar_prefetch = 0 : i64, scratch_operands = 0 : i64, tpu.core_type = #tpu.core_type<tc>, window_params = [{transform_indices = @transform_0, window_bounds = array<i64: 8, 1024>}, {transform_indices = @transform_1, window_bounds = array<i64: 8, 1024>}, {transform_indices = @transform_2, window_bounds = array<i64: 8, 1024>}]} {
    %c0 = arith.constant 0 : index
    %c0_0 = arith.constant 0 : index
    %0 = vector.load %arg2[%c0, %c0_0] : memref<8x1024xf32, #tpu.memory_space<vmem>>, vector<8x1024xf32>
    %cst = arith.constant 1.000000e+00 : f32
    %1 = vector.broadcast %cst : f32 to vector<8x1024xf32>
    %2 = arith.mulf %0, %1 : vector<8x1024xf32>
    %cst_1 = arith.constant 1.000000e+00 : f32
    %3 = vector.broadcast %cst_1 : f32 to vector<8x1024xf32>
    %4 = arith.addf %2, %3 : vector<8x1024xf32>
    %c0_2 = arith.constant 0 : index
    %c0_3 = arith.constant 0 : index
    %5 = vector.load %arg1[%c0_2, %c0_3] : memref<8x1024xf32, #tpu.memory_space<vmem>>, vector<8x1024xf32>
    %6 = arith.mulf %5, %4 : vector<8x1024xf32>
    %c0_4 = arith.constant 0 : index
    %c0_5 = arith.constant 0 : index
    %7 = vector.load %arg3[%c0_4, %c0_5] : memref<8x1024xf32, #tpu.memory_space<vmem>>, vector<8x1024xf32>
    tpu.vector_store %arg3[%c0_4, %c0_5], %6 {strides = array<i32>} : memref<8x1024xf32, #tpu.memory_space<vmem>>, vector<8x1024xf32>,
    return
  }
  func.func @transform_0(%arg0: i32) -> (i32, i32) {
    %c0_i32 = arith.constant 0 : i32
    %c0_i32_0 = arith.constant 0 : i32
    return %arg0, %c0_i32 : i32, i32
  }
  func.func @transform_1(%arg0: i32) -> (i32, i32) {
    %c0_i32 = arith.constant 0 : i32
    %c0_i32_0 = arith.constant 0 : i32
    return %arg0, %c0_i32 : i32, i32
  }
  func.func @transform_2(%arg0: i32) -> (i32, i32) {
    %c0_i32 = arith.constant 0 : i32
    %c0_i32_0 = arith.constant 0 : i32
    return %arg0, %c0_i32 : i32, i32
  }
}

</mosaic_0001>

<bundles_post_ra>
// kernel: tpu_custom_call.1
= control target key start
LH: loop header
LB: loop body
LE: loop exit
PB: predicated region body
PF: predicated region fallthrough
CT: control target
= control target key end

     0   :  { %7 = vsyncpa [#allocation3], 0  ;;  %s206_s0 = inlined_call_operand.hbm [shape: f32[8,1024], index: 0, kind: input, shape index: {}]   ;;  %s207_s1 = inlined_call_operand.hbm [shape: f32[8,1024], index: 1, kind: input, shape index: {}]   ;;  %s208_s2 = inlined_call_operand.hbm [shape: f32[8,1024], index: 2, kind: output, shape index: {}]  }
   0x1   :  { %8 = vsyncpa [#allocation6], 0 }
   0x2   :  { %9 = vsyncpa [#allocation4], 0  ;;  %s15_s11 = sshll.u32 %s206_s0, 4  ;;  %s179_s12 = smov [#allocation2]   ;;  %s16_s11 = int_to_ptr.hbm [resolvable:$true] %s15_s11 }
   0x3   :  { %s17_s13 = sshll.u32 %s179_s12, 4  ;;  %s26_s16 = sshll.u32 %s207_s1, 4  ;;  %s18_s13 = int_to_ptr.vmem [resolvable:$true] %s17_s13  ;;  %s27_s16 = int_to_ptr.hbm [resolvable:$true] %s26_s16 }
   0x4   :  { %20 = dma.hbm_to_vmem [thread:$0]  %s16_s11, 1024, %s18_s13, [#allocation3]  }
   0x5   :  { %s180_s17 = smov [#allocation5]  }
   0x6   :  { %s28_s18 = sshll.u32 %s180_s17, 4  ;;  %s29_s18 = int_to_ptr.vmem [resolvable:$true] %s28_s18 }
   0x7   :  { %31 = dma.hbm_to_vmem [thread:$0]  %s27_s16, 1024, %s29_s18, [#allocation6]  }
   0x8   :  { %173 = dma.done.wait [#allocation3], 1024  }
   0x9   :  { %174 = vsyncadd [#allocation3], 4294966272 }
   0xa   :  { %175 = dma.done.wait [#allocation6], 1024  }
   0xb   :  { %176 = vsyncadd [#allocation6], 4294966272  ;;  %v40_v0 = vld [vmem:[#allocation5] sm:$0xff]  ;;  %v41_v2 = vld [vmem:[#allocation5 + $0x8] sm:$0xff]  ;;  %s181_s0 = smov [#allocation7]   ;;  %s87_s21 = sshll.u32 %s208_s2, 4  ;;  %s88_s21 = int_to_ptr.hbm [resolvable:$true] %s87_s21 }
   0xc   :  { %v56_v1 = vld [vmem:[#allocation2] sm:$0xff]  ;;  %v48_v3 = vadd.f32 1.0, %v40_v0  ;;  %v49_v4 = vadd.f32 1.0, %v41_v2  ;;  %v57_v5 = vld [vmem:[#allocation2 + $0x8] sm:$0xff]  ;;  %v42_v6 = vld [vmem:[#allocation5 + $0x10] sm:$0xff]  ;;  %s85_s1 = sshll.u32 %s181_s0, 4  ;;  %s86_s1 = int_to_ptr.vmem [resolvable:$true] %s85_s1 }
   0xd   :  { %v58_v7 = vld [vmem:[#allocation2 + $0x10] sm:$0xff]  ;;  %v50_v8 = vadd.f32 1.0, %v42_v6  ;;  %v43_v9 = vld [vmem:[#allocation5 + $0x18] sm:$0xff]  ;;  %v44_v11 = vld [vmem:[#allocation5 + $0x20] sm:$0xff] }
   0xe   :  { %v59_v10 = vld [vmem:[#allocation2 + $0x18] sm:$0xff]  ;;  %v64_v12 = vmul.f32 %v56_v1, %v48_v3  ;;  %v65_v13 = vmul.f32 %v57_v5, %v49_v4  ;;  %v51_v14 = vadd.f32 1.0, %v43_v9  ;;  %v52_v15 = vadd.f32 1.0, %v44_v11  ;;  %v60_v16 = vld [vmem:[#allocation2 + $0x20] sm:$0xff]  ;;  %v45_v17 = vld [vmem:[#allocation5 + $0x28] sm:$0xff] }
   0xf   :  { %v61_v18 = vld [vmem:[#allocation2 + $0x28] sm:$0xff]  ;;  %v66_v19 = vmul.f32 %v58_v7, %v50_v8  ;;  %v53_v20 = vadd.f32 1.0, %v45_v17  ;;  %v46_v21 = vld [vmem:[#allocation5 + $0x30] sm:$0xff]  ;;  %v47_v23 = vld [vmem:[#allocation5 + $0x38] sm:$0xff] }
  0x10   :  { %v62_v22 = vld [vmem:[#allocation2 + $0x30] sm:$0xff]  ;;  %72 = vst [vmem:[#allocation7] sm:$0xff] %v64_v12  ;;  %v67_v24 = vmul.f32 %v59_v10, %v51_v14  ;;  %v68_v25 = vmul.f32 %v60_v16, %v52_v15  ;;  %v54_v26 = vadd.f32 1.0, %v46_v21  ;;  %v55_v27 = vadd.f32 1.0, %v47_v23  ;;  %v63_v28 = vld [vmem:[#allocation2 + $0x38] sm:$0xff] }
  0x11   :  { %73 = vst [vmem:[#allocation7 + $0x8] sm:$0xff] %v65_v13  ;;  %v69_v29 = vmul.f32 %v61_v18, %v53_v20 }
  0x12   :  { %74 = vst [vmem:[#allocation7 + $0x10] sm:$0xff] %v66_v19  ;;  %v70_v30 = vmul.f32 %v62_v22, %v54_v26  ;;  %v71_v31 = vmul.f32 %v63_v28, %v55_v27 }
  0x13   :  { %75 = vst [vmem:[#allocation7 + $0x18] sm:$0xff] %v67_v24 }
  0x14   :  { %76 = vst [vmem:[#allocation7 + $0x20] sm:$0xff] %v68_v25 }
  0x15   :  { %77 = vst [vmem:[#allocation7 + $0x28] sm:$0xff] %v69_v29 }
  0x16   :  { %78 = vst [vmem:[#allocation7 + $0x30] sm:$0xff] %v70_v30 }
  0x17   :  { %79 = vst [vmem:[#allocation7 + $0x38] sm:$0xff] %v71_v31 }
  0x18   :  { %90 = dma.vmem_to_hbm [thread:$0]  %s86_s1, 1024, %s88_s21, [#allocation4]  }
  0x19   :  { %177 = dma.done.wait [#allocation4], 1024  }
  0x1a   :  { %178 = vsyncadd [#allocation4], 4294966272 }
  0x1b   :  { %95 = vsyncpa [#allocation3], 1 }
  0x1c   :  { %96 = vsyncpa [#allocation6], 1 }
  0x1d   :  { %97 = vsyncpa [#allocation4], 1 }

</bundles_post_ra>
